<compile_context>
chip_gen: v7x
topology: tpu7x:2x2x1
jax: 0.10.0
libtpu: 0.0.40
codegen_flags: <defaults>
</compile_context>

<pallas_src>
import functools
import math

import jax
import jax.numpy as jnp
from jax.experimental import pallas as pl
from jax.experimental.pallas import tpu as pltpu

_INV_SQRT2 = 1.0 / math.sqrt(2.0)


def _round_up(x, m):
    return ((x + m - 1) // m) * m


# ----------------------------------------------------------------------------
# Kernel: one (TM, d_model) row tile  x  one (tf,) slice of d_ff.
# Grid = (M tiles [parallel], d_ff tiles [arbitrary, innermost]).
# ----------------------------------------------------------------------------
def _ffn_kernel(x_ref, w1_ref, b1_ref, w2_ref, b2_ref, o_ref, acc_ref, *,
                hidden_dtype):
    k = pl.program_id(1)

    @pl.when(k == 0)
    def _init():
        acc_ref[...] = jnp.zeros_like(acc_ref)

    # Linear 1 (f32 MXU accumulation) + bias.  (dropout = identity)
    h = jnp.dot(x_ref[...], w1_ref[...],
                preferred_element_type=jnp.float32) + b1_ref[...]

    # Exact erf GELU — matches torch.nn.GELU() default numerics.
    # TODO(synk): switch to tanh-approx GELU (EUP slot) if erf-exactness can
    # be relaxed; erf is VALU work over the whole hidden tile.
    h = 0.5 * h * (1.0 + jax.lax.erf(h * _INV_SQRT2))

    if hidden_dtype is not None:
        h = h.astype(hidden_dtype)

    # Linear 2 partial product, accumulated across d_ff tiles.  (dropout = id)
    acc_ref[...] += jnp.dot(h, w2_ref[...], preferred_element_type=jnp.float32)

    @pl.when(k == pl.num_programs(1) - 1)
    def _store():
        o_ref[...] = (acc_ref[...] + b2_ref[...]).astype(o_ref.dtype)


def _pick_ff_tile(d_ff, block_ff):
    """Largest lane-aligned (x128) tile that divides d_ff exactly, else d_ff."""
    if d_ff <= block_ff:
        return d_ff
    if d_ff % 128 == 0:
        t = (block_ff // 128) * 128
        while t >= 128:
            if d_ff % t == 0:
                return t
            t -= 128
    return d_ff


# ----------------------------------------------------------------------------
# Wrapper
# ----------------------------------------------------------------------------
def pointwise_ffn(x, w1, b1, w2, b2, *, block_m=512, block_ff=1024,
                  use_bf16=False):
    """Fused PointwiseFeedForwardNetwork forward (eval mode).

    x : (..., d_model)          any leading dims, e.g. (B, S, d_model)
    w1: (d_model, d_ff)   b1: (d_ff,)
    w2: (d_ff, d_model)   b2: (d_model,)
    """
    orig_shape = x.shape
    d_model = orig_shape[-1]
    d_ff = w1.shape[1]
    assert w1.shape == (d_model, d_ff)
    assert w2.shape == (d_ff, d_model)
    assert b1.shape == (d_ff,) and b2.shape == (d_model,)

    out_dtype = x.dtype
    x2 = x.reshape(-1, d_model)
    m = x2.shape[0]

    # MXU operand dtype: cast once here, NOT per grid step inside the kernel.
    # TODO(synk): make bf16 the default on v5e (its f32 MXU path is emulated).
    if use_bf16:
        x2 = x2.astype(jnp.bfloat16)
        w1 = w1.astype(jnp.bfloat16)
        w2 = w2.astype(jnp.bfloat16)
    b1 = b1.reshape(1, d_ff).astype(jnp.float32)
    b2 = b2.reshape(1, d_model).astype(jnp.float32)

    # ---- tile selection -----------------------------------------------------
    sub = 16 if use_bf16 else 8                 # sublane tile (packed bf16)
    block_m = max(sub, _round_up(block_m, sub))  # snap caller-provided value
    tm = min(block_m, _round_up(m, sub))
    if pl.cdiv(m, tm) < 2 and m > sub:          # keep both v7x TCs busy
        tm = max(sub, _round_up(-(-m // 2), sub))
    n_m = pl.cdiv(m, tm)                        # ragged last tile OK (masked)

    tf = _pick_ff_tile(d_ff, block_ff)
    n_ff = d_ff // tf
    resident = (n_ff == 1)                      # weights constant across grid

    # ---- explicit scoped-VMEM budget -----------------------------------------
    x_item = jnp.dtype(x2.dtype).itemsize
    w_item = jnp.dtype(w1.dtype).itemsize
    o_item = jnp.dtype(out_dtype).itemsize
    wbuf = 1 if resident else 2
    est = (2 * tm * d_model * x_item                      # x tile (2 bufs)
           + wbuf * (d_model * tf + tf * d_model) * w_item  # W1 + W2 tiles
           + wbuf * tf * 4 + d_model * 4                  # b1, b2
           + 2 * tm * d_model * o_item                    # out tile (2 bufs)
           + tm * d_model * 4                             # f32 accumulator
           + tm * tf * 4)                                 # hidden slab headroom
    vmem_limit = int(min(max(2 * est + (4 << 20), 16 << 20), 128 << 20))

    kern = functools.partial(
        _ffn_kernel, hidden_dtype=jnp.bfloat16 if use_bf16 else None)

    def build(single_buffer_resident):
        def extra(constant_index):
            # Single-buffer constant-index (resident) specs: double-buffering
            # them only burns VMEM.
            if single_buffer_resident and constant_index:
                return dict(pipeline_mode=pl.Buffered(1))
            return {}

        in_specs = [
            pl.BlockSpec((tm, d_model), lambda i, k: (i, 0)),               # x
            pl.BlockSpec((d_model, tf), lambda i, k: (0, k), **extra(resident)),  # W1
            pl.BlockSpec((1, tf), lambda i, k: (0, k), **extra(resident)),         # b1
            pl.BlockSpec((tf, d_model), lambda i, k: (k, 0), **extra(resident)),   # W2
            pl.BlockSpec((1, d_model), lambda i, k: (0, 0), **extra(True)),        # b2
        ]
        return pl.pallas_call(
            kern,
            out_shape=jax.ShapeDtypeStruct((m, d_model), out_dtype),
            grid=(n_m, n_ff),
            in_specs=in_specs,
            out_specs=pl.BlockSpec((tm, d_model), lambda i, k: (i, 0)),
            scratch_shapes=[pltpu.VMEM((tm, d_model), jnp.float32)],
            compiler_params=pltpu.CompilerParams(
                dimension_semantics=("parallel", "arbitrary"),
                vmem_limit_bytes=vmem_limit,
            ),
        )

    args = (x2, w1, b1, w2, b2)
    try:
        out = build(True)(*args)
    except Exception:
        # pipeline_mode=pl.Buffered(1) not supported by this JAX/Mosaic build:
        # fall back to default double-buffering (correctness unchanged).
        out = build(False)(*args)

    return out.reshape(orig_shape)


# ----------------------------------------------------------------------------
# Pure-JAX reference (eval mode: dropout = identity)
# ----------------------------------------------------------------------------
def ffn_reference(x, w1, b1, w2, b2):
    h = jnp.dot(x, w1, precision=jax.lax.Precision.HIGHEST) + b1
    h = 0.5 * h * (1.0 + jax.lax.erf(h / jnp.sqrt(2.0).astype(h.dtype)))
    return jnp.dot(h, w2, precision=jax.lax.Precision.HIGHEST) + b2


# ----------------------------------------------------------------------------
if __name__ == "__main__":
    key = jax.random.PRNGKey(0)
    k_x, k_w1, k_b1, k_w2, k_b2, k_x2 = jax.random.split(key, 6)

    # Small shapes consistent with the module: (B, S, d_model), d_ff > d_model.
    B, S, D_MODEL, D_FF = 2, 8, 128, 256

    x = jax.random.normal(k_x, (B, S, D_MODEL), jnp.float32)
    w1 = jax.random.normal(k_w1, (D_MODEL, D_FF), jnp.float32) * 0.05
    b1 = jax.random.normal(k_b1, (D_FF,), jnp.float32) * 0.01
    w2 = jax.random.normal(k_w2, (D_FF, D_MODEL), jnp.float32) * 0.05
    b2 = jax.random.normal(k_b2, (D_MODEL,), jnp.float32) * 0.01
    y_ref = ffn_reference(x, w1, b1, w2, b2)

    # 1) f32, multi-step M grid ("parallel") AND multi-step d_ff grid
    #    (streamed weights + f32 accumulator).
    y = pointwise_ffn(x, w1, b1, w2, b2, block_m=8, block_ff=128)
    jax.block_until_ready(y)
    assert y.shape == (B, S, D_MODEL) and y.dtype == jnp.float32
    assert jnp.allclose(y, y_ref, rtol=1e-3, atol=1e-3), "f32 FFN mismatch"

    # 2) Ragged row count (m=14, not a multiple of the row tile) -> exercises
    #    the pl.cdiv grid / masked last tile path + resident (Buffered(1)) weights.
    x_odd = jax.random.normal(k_x2, (B, 7, D_MODEL), jnp.float32)
    y_odd = pointwise_ffn(x_odd, w1, b1, w2, b2)
    jax.block_until_ready(y_odd)
    assert jnp.allclose(y_odd, ffn_reference(x_odd, w1, b1, w2, b2),
                        rtol=1e-3, atol=1e-3), "ragged FFN mismatch"

    # 3) bf16 MXU path (wrapper-side casts, f32 accumulation), streamed d_ff.
    y_bf16 = pointwise_ffn(x, w1, b1, w2, b2, block_m=512, block_ff=128,
                           use_bf16=True)
    jax.block_until_ready(y_bf16)
    assert jnp.allclose(y_bf16, y_ref, rtol=3e-2, atol=3e-2), \
        "bf16 FFN drift too large"

    print("KERNEL_OK")
</pallas_src>

<mosaic_0001>
module attributes {stable_mosaic.version = 11 : i64} {
  func.func @_ffn_kernel(%arg0: i32, %arg1: i32, %arg2: memref<8x128xf32, #tpu.memory_space<vmem>>, %arg3: memref<128x128xf32, #tpu.memory_space<vmem>>, %arg4: memref<1x128xf32, #tpu.memory_space<vmem>>, %arg5: memref<128x128xf32, #tpu.memory_space<vmem>>, %arg6: memref<1x128xf32, #tpu.memory_space<vmem>>, %arg7: memref<8x128xf32, #tpu.memory_space<vmem>>, %arg8: memref<8x128xf32, #tpu.memory_space<vmem>>) attributes {dimension_semantics = [#tpu.dimension_semantics<parallel>, #tpu.dimension_semantics<arbitrary>], iteration_bounds = array<i64: 2, 2>, scalar_prefetch = 0 : i64, scratch_operands = 1 : i64, tpu.core_type = #tpu.core_type<tc>, window_params = [{transform_indices = @transform_0, window_bounds = array<i64: 8, 128>}, {transform_indices = @transform_1, window_bounds = array<i64: 128, 128>}, {transform_indices = @transform_2, window_bounds = array<i64: 1, 128>}, {transform_indices = @transform_3, window_bounds = array<i64: 128, 128>}, {pipeline_mode = #tpu.pipeline_mode<synchronous>, transform_indices = @transform_4, window_bounds = array<i64: 1, 128>}, {transform_indices = @transform_5, window_bounds = array<i64: 8, 128>}]} {
    %c0_i32 = arith.constant 0 : i32
    %0 = arith.cmpi eq, %arg1, %c0_i32 : i32
    %1 = arith.extui %0 : i1 to i32
    %c0_i32_0 = arith.constant 0 : i32
    %2 = arith.cmpi ne, %1, %c0_i32_0 : i32
    scf.if %2 {
      %cst_17 = arith.constant 0.000000e+00 : f32
      %25 = vector.broadcast %cst_17 : f32 to vector<8x128xf32>
      %c0_18 = arith.constant 0 : index
      %c0_19 = arith.constant 0 : index
      %26 = vector.load %arg8[%c0_18, %c0_19] : memref<8x128xf32, #tpu.memory_space<vmem>>, vector<8x128xf32>
      tpu.vector_store %arg8[%c0_18, %c0_19], %25 {strides = array<i32>} : memref<8x128xf32, #tpu.memory_space<vmem>>, vector<8x128xf32>,
    } else {
    }
    %c0 = arith.constant 0 : index
    %c0_1 = arith.constant 0 : index
    %3 = vector.load %arg2[%c0, %c0_1] : memref<8x128xf32, #tpu.memory_space<vmem>>, vector<8x128xf32>
    %c0_2 = arith.constant 0 : index
    %c0_3 = arith.constant 0 : index
    %4 = vector.load %arg3[%c0_2, %c0_3] : memref<128x128xf32, #tpu.memory_space<vmem>>, vector<128x128xf32>
    %cst = arith.constant dense<0.000000e+00> : vector<8x128xf32>
    %5 = tpu.matmul %3, %4, %cst {dimension_numbers = #tpu.dot_dimension_numbers<[1], [0], [0], [1], [0, 0, 1, 1], [], []>} : vector<8x128xf32>, vector<128x128xf32>, vector<8x128xf32> -> vector<8x128xf32>
    %c0_4 = arith.constant 0 : index
    %c0_5 = arith.constant 0 : index
    %6 = vector.load %arg4[%c0_4, %c0_5] : memref<1x128xf32, #tpu.memory_space<vmem>>, vector<1x128xf32>
    %7 = vector.broadcast %6 : vector<1x128xf32> to vector<8x128xf32>
    %8 = arith.addf %5, %7 : vector<8x128xf32>
    %cst_6 = arith.constant 5.000000e-01 : f32
    %9 = vector.broadcast %cst_6 : f32 to vector<8x128xf32>
    %10 = arith.mulf %9, %8 : vector<8x128xf32>
    %cst_7 = arith.constant 0.707106769 : f32
    %11 = vector.broadcast %cst_7 : f32 to vector<8x128xf32>
    %12 = arith.mulf %8, %11 : vector<8x128xf32>
    %13 = math.erf %12 : vector<8x128xf32>
    %cst_8 = arith.constant 1.000000e+00 : f32
    %14 = vector.broadcast %cst_8 : f32 to vector<8x128xf32>
    %15 = arith.addf %14, %13 : vector<8x128xf32>
    %16 = arith.mulf %10, %15 : vector<8x128xf32>
    %c0_9 = arith.constant 0 : index
    %c0_10 = arith.constant 0 : index
    %17 = vector.load %arg8[%c0_9, %c0_10] : memref<8x128xf32, #tpu.memory_space<vmem>>, vector<8x128xf32>
    %c0_11 = arith.constant 0 : index
    %c0_12 = arith.constant 0 : index
    %18 = vector.load %arg5[%c0_11, %c0_12] : memref<128x128xf32, #tpu.memory_space<vmem>>, vector<128x128xf32>
    %cst_13 = arith.constant dense<0.000000e+00> : vector<8x128xf32>
    %19 = tpu.matmul %16, %18, %cst_13 {dimension_numbers = #tpu.dot_dimension_numbers<[1], [0], [0], [1], [0, 0, 1, 1], [], []>} : vector<8x128xf32>, vector<128x128xf32>, vector<8x128xf32> -> vector<8x128xf32>
    %20 = arith.addf %17, %19 : vector<8x128xf32>
    %c0_14 = arith.constant 0 : index
    %c0_15 = arith.constant 0 : index
    %21 = vector.load %arg8[%c0_14, %c0_15] : memref<8x128xf32, #tpu.memory_space<vmem>>, vector<8x128xf32>
    tpu.vector_store %arg8[%c0_14, %c0_15], %20 {strides = array<i32>} : memref<8x128xf32, #tpu.memory_space<vmem>>, vector<8x128xf32>,
    %c1_i32 = arith.constant 1 : i32
    %22 = arith.cmpi eq, %arg1, %c1_i32 : i32
    %23 = arith.extui %22 : i1 to i32
    %c0_i32_16 = arith.constant 0 : i32
    %24 = arith.cmpi ne, %23, %c0_i32_16 : i32
    scf.if %24 {
      %c0_17 = arith.constant 0 : index
      %c0_18 = arith.constant 0 : index
      %25 = vector.load %arg8[%c0_17, %c0_18] : memref<8x128xf32, #tpu.memory_space<vmem>>, vector<8x128xf32>
      %c0_19 = arith.constant 0 : index
      %c0_20 = arith.constant 0 : index
      %26 = vector.load %arg6[%c0_19, %c0_20] : memref<1x128xf32, #tpu.memory_space<vmem>>, vector<1x128xf32>
      %27 = vector.broadcast %26 : vector<1x128xf32> to vector<8x128xf32>
      %28 = arith.addf %25, %27 : vector<8x128xf32>
      %c0_21 = arith.constant 0 : index
      %c0_22 = arith.constant 0 : index
      %29 = vector.load %arg7[%c0_21, %c0_22] : memref<8x128xf32, #tpu.memory_space<vmem>>, vector<8x128xf32>
      tpu.vector_store %arg7[%c0_21, %c0_22], %28 {strides = array<i32>} : memref<8x128xf32, #tpu.memory_space<vmem>>, vector<8x128xf32>,
    } else {
    }
    return
  }
  func.func @transform_0(%arg0: i32, %arg1: i32) -> (i32, i32) {
    %c0_i32 = arith.constant 0 : i32
    %c0_i32_0 = arith.constant 0 : i32
    return %arg0, %c0_i32 : i32, i32
  }
  func.func @transform_1(%arg0: i32, %arg1: i32) -> (i32, i32) {
    %c0_i32 = arith.constant 0 : i32
    %c0_i32_0 = arith.constant 0 : i32
    return %c0_i32, %arg1 : i32, i32
  }
  func.func @transform_2(%arg0: i32, %arg1: i32) -> (i32, i32) {
    %c0_i32 = arith.constant 0 : i32
    %c0_i32_0 = arith.constant 0 : i32
    return %c0_i32, %arg1 : i32, i32
  }
  func.func @transform_3(%arg0: i32, %arg1: i32) -> (i32, i32) {
    %c0_i32 = arith.constant 0 : i32
    %c0_i32_0 = arith.constant 0 : i32
    return %arg1, %c0_i32 : i32, i32
  }
  func.func @transform_4(%arg0: i32, %arg1: i32) -> (i32, i32) {
    %c0_i32 = arith.constant 0 : i32
    %c0_i32_0 = arith.constant 0 : i32
    %c0_i32_1 = arith.constant 0 : i32
    return %c0_i32, %c0_i32_0 : i32, i32
  }
  func.func @transform_5(%arg0: i32, %arg1: i32) -> (i32, i32) {
    %c0_i32 = arith.constant 0 : i32
    %c0_i32_0 = arith.constant 0 : i32
    return %arg0, %c0_i32 : i32, i32
  }
}

module attributes {stable_mosaic.version = 11 : i64} {
  func.func @_ffn_kernel(%arg0: i32, %arg1: i32, %arg2: memref<8x128xf32, #tpu.memory_space<vmem>>, %arg3: memref<128x128xf32, #tpu.memory_space<vmem>>, %arg4: memref<1x128xf32, #tpu.memory_space<vmem>>, %arg5: memref<128x128xf32, #tpu.memory_space<vmem>>, %arg6: memref<1x128xf32, #tpu.memory_space<vmem>>, %arg7: memref<8x128xf32, #tpu.memory_space<vmem>>, %arg8: memref<8x128xf32, #tpu.memory_space<vmem>>) attributes {dimension_semantics = [#tpu.dimension_semantics<parallel>, #tpu.dimension_semantics<arbitrary>], iteration_bounds = array<i64: 2, 2>, scalar_prefetch = 0 : i64, scratch_operands = 1 : i64, tpu.core_type = #tpu.core_type<tc>, window_params = [{transform_indices = @transform_0, window_bounds = array<i64: 8, 128>}, {transform_indices = @transform_1, window_bounds = array<i64: 128, 128>}, {transform_indices = @transform_2, window_bounds = array<i64: 1, 128>}, {transform_indices = @transform_3, window_bounds = array<i64: 128, 128>}, {pipeline_mode = #tpu.pipeline_mode<synchronous>, transform_indices = @transform_4, window_bounds = array<i64: 1, 128>}, {transform_indices = @transform_5, window_bounds = array<i64: 8, 128>}]} {
    %c0_i32 = arith.constant 0 : i32
    %0 = arith.cmpi eq, %arg1, %c0_i32 : i32
    %1 = arith.extui %0 : i1 to i32
    %c0_i32_0 = arith.constant 0 : i32
    %2 = arith.cmpi ne, %1, %c0_i32_0 : i32
    scf.if %2 {
      %cst_17 = arith.constant 0.000000e+00 : f32
      %25 = vector.broadcast %cst_17 : f32 to vector<8x128xf32>
      %c0_18 = arith.constant 0 : index
      %c0_19 = arith.constant 0 : index
      %26 = vector.load %arg8[%c0_18, %c0_19] : memref<8x128xf32, #tpu.memory_space<vmem>>, vector<8x128xf32>
      tpu.vector_store %arg8[%c0_18, %c0_19], %25 {strides = array<i32>} : memref<8x128xf32, #tpu.memory_space<vmem>>, vector<8x128xf32>,
    } else {
    }
    %c0 = arith.constant 0 : index
    %c0_1 = arith.constant 0 : index
    %3 = vector.load %arg2[%c0, %c0_1] : memref<8x128xf32, #tpu.memory_space<vmem>>, vector<8x128xf32>
    %c0_2 = arith.constant 0 : index
    %c0_3 = arith.constant 0 : index
    %4 = vector.load %arg3[%c0_2, %c0_3] : memref<128x128xf32, #tpu.memory_space<vmem>>, vector<128x128xf32>
    %cst = arith.constant dense<0.000000e+00> : vector<8x128xf32>
    %5 = tpu.matmul %3, %4, %cst {dimension_numbers = #tpu.dot_dimension_numbers<[1], [0], [0], [1], [0, 0, 1, 1], [], []>} : vector<8x128xf32>, vector<128x128xf32>, vector<8x128xf32> -> vector<8x128xf32>
    %c0_4 = arith.constant 0 : index
    %c0_5 = arith.constant 0 : index
    %6 = vector.load %arg4[%c0_4, %c0_5] : memref<1x128xf32, #tpu.memory_space<vmem>>, vector<1x128xf32>
    %7 = vector.broadcast %6 : vector<1x128xf32> to vector<8x128xf32>
    %8 = arith.addf %5, %7 : vector<8x128xf32>
    %cst_6 = arith.constant 5.000000e-01 : f32
    %9 = vector.broadcast %cst_6 : f32 to vector<8x128xf32>
    %10 = arith.mulf %9, %8 : vector<8x128xf32>
    %cst_7 = arith.constant 0.707106769 : f32
    %11 = vector.broadcast %cst_7 : f32 to vector<8x128xf32>
    %12 = arith.mulf %8, %11 : vector<8x128xf32>
    %13 = math.erf %12 : vector<8x128xf32>
    %cst_8 = arith.constant 1.000000e+00 : f32
    %14 = vector.broadcast %cst_8 : f32 to vector<8x128xf32>
    %15 = arith.addf %14, %13 : vector<8x128xf32>
    %16 = arith.mulf %10, %15 : vector<8x128xf32>
    %c0_9 = arith.constant 0 : index
    %c0_10 = arith.constant 0 : index
    %17 = vector.load %arg8[%c0_9, %c0_10] : memref<8x128xf32, #tpu.memory_space<vmem>>, vector<8x128xf32>
    %c0_11 = arith.constant 0 : index
    %c0_12 = arith.constant 0 : index
    %18 = vector.load %arg5[%c0_11, %c0_12] : memref<128x128xf32, #tpu.memory_space<vmem>>, vector<128x128xf32>
    %cst_13 = arith.constant dense<0.000000e+00> : vector<8x128xf32>
    %19 = tpu.matmul %16, %18, %cst_13 {dimension_numbers = #tpu.dot_dimension_numbers<[1], [0], [0], [1], [0, 0, 1, 1], [], []>} : vector<8x128xf32>, vector<128x128xf32>, vector<8x128xf32> -> vector<8x128xf32>
    %20 = arith.addf %17, %19 : vector<8x128xf32>
    %c0_14 = arith.constant 0 : index
    %c0_15 = arith.constant 0 : index
    %21 = vector.load %arg8[%c0_14, %c0_15] : memref<8x128xf32, #tpu.memory_space<vmem>>, vector<8x128xf32>
    tpu.vector_store %arg8[%c0_14, %c0_15], %20 {strides = array<i32>} : memref<8x128xf32, #tpu.memory_space<vmem>>, vector<8x128xf32>,
    %c1_i32 = arith.constant 1 : i32
    %22 = arith.cmpi eq, %arg1, %c1_i32 : i32
    %23 = arith.extui %22 : i1 to i32
    %c0_i32_16 = arith.constant 0 : i32
    %24 = arith.cmpi ne, %23, %c0_i32_16 : i32
    scf.if %24 {
      %c0_17 = arith.constant 0 : index
      %c0_18 = arith.constant 0 : index
      %25 = vector.load %arg8[%c0_17, %c0_18] : memref<8x128xf32, #tpu.memory_space<vmem>>, vector<8x128xf32>
      %c0_19 = arith.constant 0 : index
      %c0_20 = arith.constant 0 : index
      %26 = vector.load %arg6[%c0_19, %c0_20] : memref<1x128xf32, #tpu.memory_space<vmem>>, vector<1x128xf32>
      %27 = vector.broadcast %26 : vector<1x128xf32> to vector<8x128xf32>
      %28 = arith.addf %25, %27 : vector<8x128xf32>
      %c0_21 = arith.constant 0 : index
      %c0_22 = arith.constant 0 : index
      %29 = vector.load %arg7[%c0_21, %c0_22] : memref<8x128xf32, #tpu.memory_space<vmem>>, vector<8x128xf32>
      tpu.vector_store %arg7[%c0_21, %c0_22], %28 {strides = array<i32>} : memref<8x128xf32, #tpu.memory_space<vmem>>, vector<8x128xf32>,
    } else {
    }
    return
  }
  func.func @transform_0(%arg0: i32, %arg1: i32) -> (i32, i32) {
    %c0_i32 = arith.constant 0 : i32
    %c0_i32_0 = arith.constant 0 : i32
    return %arg0, %c0_i32 : i32, i32
  }
  func.func @transform_1(%arg0: i32, %arg1: i32) -> (i32, i32) {
    %c0_i32 = arith.constant 0 : i32
    %c0_i32_0 = arith.constant 0 : i32
    return %c0_i32, %arg1 : i32, i32
  }
  func.func @transform_2(%arg0: i32, %arg1: i32) -> (i32, i32) {
    %c0_i32 = arith.constant 0 : i32
    %c0_i32_0 = arith.constant 0 : i32
    return %c0_i32, %arg1 : i32, i32
  }
  func.func @transform_3(%arg0: i32, %arg1: i32) -> (i32, i32) {
    %c0_i32 = arith.constant 0 : i32
    %c0_i32_0 = arith.constant 0 : i32
    return %arg1, %c0_i32 : i32, i32
  }
  func.func @transform_4(%arg0: i32, %arg1: i32) -> (i32, i32) {
    %c0_i32 = arith.constant 0 : i32
    %c0_i32_0 = arith.constant 0 : i32
    %c0_i32_1 = arith.constant 0 : i32
    return %c0_i32, %c0_i32_0 : i32, i32
  }
  func.func @transform_5(%arg0: i32, %arg1: i32) -> (i32, i32) {
    %c0_i32 = arith.constant 0 : i32
    %c0_i32_0 = arith.constant 0 : i32
    return %arg0, %c0_i32 : i32, i32
  }
}

</mosaic_0001>

<bundles_post_ra>
// kernel: tpu_custom_call.1
= control target key start
LH: loop header
LB: loop body
LE: loop exit
PB: predicated region body
PF: predicated region fallthrough
CT: control target
= control target key end

     0   :  { %s1670_s0 = inlined_call_operand.hbm [shape: f32[16,128], index: 0, kind: input, shape index: {}]   ;;  %s1671_s1 = inlined_call_operand.hbm [shape: f32[128,256], index: 1, kind: input, shape index: {}]   ;;  %s1672_s2 = inlined_call_operand.vmem [shape: f32[1,256], index: 2, kind: input, shape index: {}]   ;;  %s1673_s3 = inlined_call_operand.hbm [shape: f32[256,128], index: 3, kind: input, shape index: {}]   ;;  %s1674_s4 = inlined_call_operand.vmem [shape: f32[1,128], index: 4, kind: input, shape index: {}]   ;;  %s1675_s5 = inlined_call_operand.hbm [shape: f32[16,128], index: 5, kind: output, shape index: {}]  }
   0x1   :  { %1688 = sst [smem:[#allocation20_spill]] %s1671_s1 }
   0x2   :  { %1689 = sst [smem:[#allocation21_spill]] %s1672_s2 }
   0x3   :  { %1690 = sst [smem:[#allocation22_spill]] %s1674_s4 }
   0x4   :  { %1691 = sst [smem:[#allocation23_spill]] %s1675_s5 }
   0x5   :  { %10 = vsyncpa [#allocation4], 0 }
   0x6   :  { %12 = vsyncpa [#allocation4 + $0x1], 0 }
   0x7   :  { %13 = vsyncpa [#allocation7], 0 }
   0x8   :  { %15 = vsyncpa [#allocation7 + $0x1], 0 }
   0x9   :  { %16 = vsyncpa [#allocation5], 0 }
   0xa   :  { %18 = vsyncpa [#allocation5 + $0x1], 0  ;;  %s1254_s18 = smov 0   ;;  %s1256_s19 = smov 0  }
   0xb   :  { %s1258_s20 = smov 0   ;;  %s1260_s21 = smov 0  }
   0xc   :  { %s1262_s22 = smov 0   ;;  %s1264_s23 = smov 0  }
   0xd   :  { %s1266_s24 = smov 0   ;;  %s1268_s25 = smov 0  }
   0xe   :  { %s1270_s26 = smov 0   ;;  %s1272_s27 = smov 0  }
   0xf   :  { %s1274_s28 = smov 0  }
  0x10 LB: > { %1692 = sst [smem:[#allocation13_spill]] %s1191_s23  ;;  %p51_p0 = scmp.eq.s32.totalorder %s1211_s28, 0  ;;  %s1211_s28 = sphi %s1274_s28, %s24_s28   ;;  %s1207_s27 = sphi %s1272_s27, %s1729_s27   ;;  %s1203_s26 = sphi %s1270_s26, %s1736_s26   ;;  %s1199_s25 = sphi %s1268_s25, %s1727_s25   ;;  %s1195_s24 = sphi %s1266_s24, %s1735_s24   ;;  %s1191_s23 = sphi %s1264_s23, %s1726_s23   ;;  %s1187_s22 = sphi %s1262_s22, %s1734_s22   ;;  %s1183_s21 = sphi %s1260_s21, %s1733_s21   ;;  %s1179_s20 = sphi %s1258_s20, %s1732_s20   ;;  %s1175_s19 = sphi %s1256_s19, %s1731_s19   ;;  %s1171_s18 = sphi %s1254_s18, %s1730_s18  }
  0x11   : > { %1693 = sst [smem:[#allocation14_spill]] %s1199_s25  ;;  %p76_p1 = scmp.ne.s32.totalorder %s1179_s20, %s1175_s19 }
  0x12   : > { %1694 = sst [smem:[#allocation15_spill]] %s1207_s27  ;;  %p1676_p2 = scmp.lt.s32.totalorder %s1211_s28, 4 }
  0x13   : > { %s226_s30 = sand.u32 1, %s1211_s28   ;;  %p78_p3 = por %p76_p1, %p51_p0 }
  0x14   : > { %s228_s6 = sand.u32 1, %s1179_s20   ;;  %s704_s7 = sshll.u32 %s1203_s26, 7 }
  0x15   : > { %s1319_s8 = sshll.u32 %s228_s6, 7  ;;  %s1695_s1 = sld [smem:[#allocation20_spill]] }
  0x16   : > { %p1328_p4 = pnand %p1676_p2, %p78_p3  ;;  %s230_s13 = scalar_lea.vmem [#allocation6], %s1319_s8 }
  0x17   : > { %s236_s14 = sshll.u32 %s230_s13, 4  ;;  %s1335_s15 = scalar_lea.sflag [#allocation7], %s226_s30  ;;  %s1333_s14 = int_to_ptr.vmem [resolvable:$true] %s236_s14 }
  0x18   : > { %p1681_p6 = pneg %p1328_p4 }
  0x1b   : > { %s1324_s11 = scalar_lea.hbm %s1695_s1, %s704_s7  ;;  %s1000_s7 = scalar_lea.hbm %s1695_s1, 4096 }
  0x1c   : > { %s995_s16 = scalar_lea.hbm %s1324_s11, 2048  ;;  %p1001_p9 = scmp.lt.u32.totalorder %s1324_s11, %s1695_s1 }
  0x1d   : > { %p996_p5 = scmp.ne.s32.totalorder %s1324_s11, %s995_s16  ;;  %p1002_p10 = scmp.lt.u32.totalorder %s1000_s7, %s995_s16 }
  0x1e   : > { %p1004_p12 = scmp.lt.u32.totalorder %s995_s16, %s1324_s11 }
  0x1f   : > { %p998_p7 = pnand %p1681_p6, %p996_p5  ;;  %p1003_p11 = por %p1002_p10, %p1001_p9 }
  0x21   : > { %p999_p8 = pneg %p998_p7  ;;  %p1005_p13 = por %p1004_p12, %p1003_p11 }
  0x23   : > { %p1006_p1 = pnand %p1005_p13, %p999_p8 }
  0x25   : > { %1009 = shalt.err (!%p1006_p1)
}
  0x26   : > { %s1010_s30 = scalar_lea.vmem %s1333_s14, 2048  ;;  %s1213_s13 = smov [#allocation6]  }
  0x27   : > { %p1011_p3 = scmp.ne.s32.totalorder %s1333_s14, %s1010_s30  ;;  %s1015_s17 = sshll.u32 %s1213_s13, 4  ;;  %s1016_s17 = int_to_ptr.vmem [resolvable:$false] %s1015_s17 }
  0x28   : > { %s1017_s6 = scalar_lea.vmem %s1016_s17, 4096  ;;  %p1018_p2 = scmp.lt.s32.totalorder %s1333_s14, %s1016_s17 }
  0x29   : > { %p1013_p5 = pnand %p1011_p3, %p1681_p6  ;;  %p1019_p9 = scmp.lt.s32.totalorder %s1017_s6, %s1010_s30 }
  0x2b   : > { %p1014_p7 = pneg %p1013_p5  ;;  %p1020_p10 = por %p1019_p9, %p1018_p2 }
  0x2d   : > { %p1021_p11 = pnand %p1020_p10, %p1014_p7 }
  0x2f   : > { %1024 = shalt.err (!%p1021_p11)
}
  0x30   : > { %s1214_s16 = smov 256   ;;  %s1677_s7 = smov 128  }
  0x31   : > { %s1678_s9 = smov 8   ;;  %p708_p2 = scmp.ge.s32.totalorder %s1211_s28, 1 }
  0x32   : > { %888 = dma.hbm_to_vmem [thread:$0]  (!%p1328_p4), %s1324_s11, 2048, %s1333_s14, %s1335_s15, %s1214_s16, %s1677_s7, %s1678_s9  }
  0x33   : > { %p271_p8 = scmp.lt.s32.totalorder %s1211_s28, 5  ;;  %s1372_s30 = sadd.s32 4294967295, %s1211_s28  }
  0x34   : > { %s698_s13 = sadd.s32 4294967294, %s1211_s28   ;;  %s33_s17 = sadd.s32 1, %s1203_s26 }
  0x35   : > { %p1367_p12 = pnand %p708_p2, %p271_p8  ;;  %p34_p13 = scmp.ge.s32.totalorder %s33_s17, 2 }
  0x36   : > { %s36_s6 = sadd.s32 1, %s1207_s27  ;;  %s43_s11 = sadd.s32 1, %s1191_s23 }
  0x37   : > { %s1697_s10 = scalar_select %p1367_p12, 1, 0 }
  0x38   : > { %p50_p1 = scmp.ne.s32.totalorder %s1191_s23, %s1187_s22  ;;  %s1738_s17 = smov (%p34_p13, %s33_s17), 0 }
  0x39   : > { %1698 = sst [smem:[#allocation16_spill]] %s1738_s17  ;;  %s1740_s6 = smov (!%p34_p13, %s36_s6), %s1207_s27 }
  0x3a   : > { %p1388_p3 = por %p51_p0, %p50_p1  ;;  %p56_p5 = scmp.ne.s32.totalorder %s1187_s22, %s1183_s21 }
  0x3b   : > { %p38_p7 = scmp.ge.s32.totalorder %s1740_s6, 2  ;;  %p57_p9 = scmp.eq.s32.totalorder %s1372_s30, 0 }
  0x3c   : > { %s66_s16 = ssub.s32 %s1203_s26, %s1738_s17  ;;  %p82_p10 = scmp.ne.s32.totalorder %s1175_s19, %s1171_s18 }
  0x3d   : > { %s1742_s6 = smov (%p38_p7, %s1740_s6), 0  ;;  %p1404_p11 = por %p57_p9, %p56_p5 }
  0x3e   : > { %1700 = sst [smem:[#allocation17_spill]] %s1742_s6  ;;  %p67_p0 = scmp.eq.s32.totalorder %s66_s16, 0 }
  0x3f   : > { %s1701_s7 = scalar_select %p1404_p11, 1, 0 }
  0x40   : > { %s40_s9 = ssub.s32 %s1207_s27, %s1742_s6  ;;  %p1410_p2 = por %p82_p10, %p57_p9 }
  0x41   : > { %p41_p8 = scmp.eq.s32.totalorder %s40_s9, 0  ;;  %p179_p13 = scmp.eq.s32.totalorder %s1372_s30, 3 }
  0x42   : > { %s1702_s29 = scalar_select %p1410_p2, 1, 0 }
  0x43   : > { %s1703_s1 = sadd.s32 1, %s1179_s20  ;;  %p1426_p7 = por %p179_p13, %p50_p1 }
  0x44   : > { %s1418_s18 = scalar_select %p67_p0, %s1179_s20, %s1703_s1  }
  0x45   : > { %s1421_s17 = scalar_select %p41_p8, %s1191_s23, %s43_s11  }
  0x46   : > { %1704 = sst [smem:[#allocation18_spill]] %s1418_s18  ;;  %p185_p6 = scmp.eq.s32.totalorder %s698_s13, 3 }
  0x47   : > { %1705 = sst [smem:[#allocation19_spill]] %s1421_s17  ;;  %s208_s25 = sand.u32 1, %s1191_s23  }
  0x48   : > { %s1706_s5 = scalar_select %p1426_p7, 1, 0 }
  0x49   : > { %s702_s16 = sshll.u32 %s1207_s27, 7  ;;  %p1435_p9 = por %p185_p6, %p56_p5 }
  0x4a   : > { %s701_s9 = sshll.u32 %s208_s25, 3  ;;  %s1442_s1 = scalar_lea.hbm %s1670_s0, %s702_s16 }
  0x4b   : > { %s1707_s6 = scalar_select %p1435_p9, 1, 0 }
  0x4c   : > { %p1708_p10 = scmp.lt.s32.totalorder %s1211_s28, 4  ;;  %s212_s11 = scalar_lea.vmem [#allocation3], %s701_s9 }
  0x4d   : > { %s219_s27 = sshll.u32 %s212_s11, 4  ;;  %s209_s17 = scalar_lea.sflag [#allocation4], %s208_s25  ;;  %s1452_s27 = int_to_ptr.vmem [resolvable:$true] %s219_s27 }
  0x4e   : > { %p1448_p1 = pnand %p1708_p10, %p1388_p3  ;;  %s1025_s2 = scalar_lea.hbm %s1442_s1, 128 }
  0x4f   : > { %p1026_p6 = scmp.ne.s32.totalorder %s1442_s1, %s1025_s2  ;;  %s1030_s16 = scalar_lea.hbm %s1670_s0, 256 }
  0x50   : > { %p1027_p5 = pneg %p1448_p1  ;;  %p1031_p3 = scmp.lt.u32.totalorder %s1442_s1, %s1670_s0 }
  0x51   : > { %p1032_p13 = scmp.lt.u32.totalorder %s1030_s16, %s1025_s2  ;;  %p1034_p9 = scmp.lt.u32.totalorder %s1025_s2, %s1442_s1 }
  0x52   : > { %p1028_p0 = pnand %p1027_p5, %p1026_p6 }
  0x53   : > { %p1033_p10 = por %p1032_p13, %p1031_p3 }
  0x54   : > { %p1029_p8 = pneg %p1028_p0 }
  0x55   : > { %p1035_p7 = por %p1034_p9, %p1033_p10 }
  0x57   : > { %p1036_p2 = pnand %p1035_p7, %p1029_p8 }
  0x59   : > { %1039 = shalt.err (!%p1036_p2)
}
  0x5a   : > { %s1040_s25 = scalar_lea.vmem %s1452_s27, 128  ;;  %s1217_s9 = smov [#allocation3]  }
  0x5b   : > { %p1041_p6 = scmp.ne.s32.totalorder %s1452_s27, %s1040_s25  ;;  %s1045_s11 = sshll.u32 %s1217_s9, 4  ;;  %s1046_s11 = int_to_ptr.vmem [resolvable:$false] %s1045_s11 }
  0x5c   : > { %s1047_s23 = scalar_lea.vmem %s1046_s11, 256  ;;  %p1048_p12 = scmp.lt.s32.totalorder %s1452_s27, %s1046_s11 }
  0x5d   : > { %p1043_p0 = pnand %p1041_p6, %p1027_p5  ;;  %p1049_p3 = scmp.lt.s32.totalorder %s1047_s23, %s1040_s25 }
  0x5f   : > { %p1044_p11 = pneg %p1043_p0  ;;  %p1050_p13 = por %p1049_p3, %p1048_p12 }
  0x61   : > { %p1051_p9 = pnand %p1050_p13, %p1044_p11 }
  0x63   : > { %1054 = shalt.err (!%p1051_p9)
}
  0x64   : > { %885 = dma.hbm_to_vmem [thread:$0]  (!%p1448_p1), %s1442_s1, 128, %s1452_s27, %s209_s17  }
  0x65   : > { %s721_s18 = sshll.u32 %s1203_s26, 11  ;;  %s256_s2 = scalar_lea.vmem [#allocation8], %s1319_s8 }
  0x66   : > { %s263_s4 = sshll.u32 %s256_s2, 4  ;;  %s1484_s9 = scalar_lea.hbm %s1673_s3, %s721_s18  ;;  %s1486_s4 = int_to_ptr.vmem [resolvable:$true] %s263_s4 }
  0x67   : > { %s1055_s13 = scalar_lea.hbm %s1484_s9, 2048  ;;  %p1710_p11 = pneg %p1328_p4 }
  0x68   : > { %p1056_p12 = scmp.ne.s32.totalorder %s1484_s9, %s1055_s13  ;;  %s1060_s17 = scalar_lea.hbm %s1673_s3, 4096 }
  0x69   : > { %p1061_p1 = scmp.lt.u32.totalorder %s1484_s9, %s1673_s3  ;;  %p1062_p5 = scmp.lt.u32.totalorder %s1060_s17, %s1055_s13 }
  0x6a   : > { %p1058_p2 = pnand %p1056_p12, %p1710_p11  ;;  %p1064_p10 = scmp.lt.u32.totalorder %s1055_s13, %s1484_s9 }
  0x6b   : > { %p1063_p8 = por %p1062_p5, %p1061_p1 }
  0x6c   : > { %p1059_p7 = pneg %p1058_p2 }
  0x6d   : > { %p1065_p6 = por %p1064_p10, %p1063_p8 }
  0x6f   : > { %p1066_p0 = pnand %p1065_p6, %p1059_p7 }
  0x71   : > { %1069 = shalt.err (!%p1066_p0)
}
  0x72   : > { %s1070_s11 = scalar_lea.vmem %s1486_s4, 2048  ;;  %p1711_p13 = pmov %p1710_p11 }
  0x73   : > { %p1071_p3 = scmp.ne.s32.totalorder %s1486_s4, %s1070_s11  ;;  %s1218_s23 = smov [#allocation8]  }
  0x74   : > { %s1075_s18 = sshll.u32 %s1218_s23, 4  ;;  %s1076_s18 = int_to_ptr.vmem [resolvable:$false] %s1075_s18 }
  0x75   : > { %p1073_p9 = pnand %p1071_p3, %p1711_p13  ;;  %s1077_s2 = scalar_lea.vmem %s1076_s18, 4096 }
  0x76   : > { %p1078_p11 = scmp.lt.s32.totalorder %s1486_s4, %s1076_s18  ;;  %p1079_p2 = scmp.lt.s32.totalorder %s1077_s2, %s1070_s11 }
  0x77   : > { %p1074_p12 = pneg %p1073_p9 }
  0x78   : > { %p1080_p1 = por %p1079_p2, %p1078_p11 }
  0x7a   : > { %p1081_p5 = pnand %p1080_p1, %p1074_p12 }
  0x7c   : > { %1084 = shalt.err (!%p1081_p5)
}
  0x7d   : > { %s1712_s14 = smov 8   ;;  %s1713_s16 = smov 128  }
  0x7e   : > { %891 = dma.hbm_to_vmem [thread:$0]  (!%p1328_p4), %s1484_s9, 2048, %s1486_s4, %s1335_s15, %s1713_s16, %s1713_s16, %s1712_s14  }
  0x7f   : > { %p1714_p7 = scmp.ne.s32.totalorder %s1697_s10, 0 }
  0x80   : > { %s1518_s13 = sand.u32 (!%p1714_p7), 1, %s1187_s22   ;;  %p1715_p8 = scmp.ne.s32.totalorder (!%p1714_p7), %s1701_s7, 0 }
  0x81   : > { %275 = sbr.rel (%p1714_p7) target bundleno = 671 (0x29f), region = 40  ;;  %s709_s27 = sshll.u32 (!%p1714_p7), %s1518_s13, 3 }
  0x82   : > { %s278_s8 = scalar_lea.sflag (!%p1714_p7), [#allocation4], %s1518_s13  ;;  %s1522_s17 = scalar_lea.vmem (!%p1714_p7), [#allocation3], %s709_s27 }
  0x88   : > { %1158 = dma.done.wait (%p1715_p8), %s278_s8, 128  }
  0x89   : > { %1160 = vsyncadd (%p1715_p8), %s278_s8, 4294967168  ;;  %s286_s12 = sand.u32 1, %s1372_s30   ;;  %s288_s15 = sand.u32 1, %s1175_s19  }
  0x8a   : > { %s710_s10 = sshll.u32 %s288_s15, 7  ;;  %s287_s4 = scalar_lea.sflag [#allocation7], %s286_s12 }
  0x8b   : > { %s1530_s9 = scalar_lea.vmem [#allocation6], %s710_s10  ;;  %p1716_p4 = scmp.ne.s32.totalorder %s1702_s29, 0 }
  0x8d   : > { %1162 = dma.done.wait (%p1716_p4), %s287_s4, 4096  }
  0x8e   : > { %1164 = vsyncadd (%p1716_p4), %s287_s4, 4294963200  ;;  %p339_p10 = scmp.lt.s32.totalorder %s1195_s24, 1  ;;  %s1717_s11 = sld [smem:[#allocation21_spill]] }
  0x8f   : > { %s1544_s23 = scalar_lea.vmem [#allocation8], %s710_s10  ;;  %s1546_s18 = scalar_lea.vmem [#allocation9], %s709_s27 }
  0x90   : > { %s1538_s1 = scalar_select %p339_p10, %s1195_s24, 1 }
  0x91   : > { %p713_p6 = scmp.ne.s32.totalorder %s1195_s24, 0 }
  0x92   : > { %v1219_v0 = vmov (!%p713_p6), 0.0  }
  0x93   : > { %346 = sbr.rel (%p713_p6) target bundleno = 154 (0x9a), region = 56  ;;  %347 = vst [vmem:[#allocation2] sm:$0xff] (!%p713_p6), %v1219_v0 }
  0x94   : > { %s341_s30 = scalar_lea.vmem %s1717_s11, %s1538_s1 }
  0x9a PF: > { %v349_v1 = vld [vmem:[%s1530_s9] sm:$0xff]  ;;  %v350_v2 = vld [vmem:[%s1530_s9 + $0x8] sm:$0xff]  ;;  %v351_v3 = vld [vmem:[%s1530_s9 + $0x10] sm:$0xff]  ;;  %v1220_v4 = vmov 0.0|0.0   ;;  %vm1221_vm0 = vmmov 0   ;;  %v1222_v7 = vmov 0.0  }
  0x9b   : > { %826 = vmatprep.subr.bf16.mxu0 %v1220_v4  ;;  %v827_v5 = vpack.c.bf16 %v350_v2, %v349_v1  ;;  %v352_v6 = vld [vmem:[%s1530_s9 + $0x18] sm:$0xff]  ;;  %788 = vmatprep.mubr.msk.f32.mxu0 %vm1221_vm0, %v1222_v7  ;;  %v353_v9 = vld [vmem:[%s1530_s9 + $0x20] sm:$0xff]  ;;  %v354_v10 = vld [vmem:[%s1530_s9 + $0x28] sm:$0xff]  ;;  %p715_p0 = scmp.ne.s32.totalorder %s1195_s24, 1 }
  0x9c   : > { %850 = vmatprep.subr.bf16.mxu1 %v1220_v4  ;;  %823 = vmatprep.mubr.msk.f32.mxu1 %vm1221_vm0, %v1222_v7  ;;  %v830_v8 = vpack.c.bf16 %v352_v6, %v351_v3  ;;  %v448_v11 = vld [vmem:[%s1544_s23] sm:$0xff]  ;;  %v449_v12 = vld [vmem:[%s1544_s23 + $0x8] sm:$0xff]  ;;  %v450_v13 = vld [vmem:[%s1544_s23 + $0x10] sm:$0xff]  ;;  %v833_v15 = vpack.c.bf16 %v354_v10, %v353_v9  ;;  %s1719_s8 = sld [smem:[#allocation22_spill]] (!%p715_p0) }
  0x9d   : > { %828 = vmatpush3.bf16.msra.mxu0 %v827_v5  ;;  %v451_v14 = vld [vmem:[%s1544_s23 + $0x18] sm:$0xff]  ;;  %v851_v16 = vpack.c.bf16 %v449_v12, %v448_v11  ;;  %v355_v17 = vld [vmem:[%s1530_s9 + $0x30] sm:$0xff]  ;;  %v452_v20 = vld [vmem:[%s1544_s23 + $0x20] sm:$0xff] }
  0x9e   : > { %829 = vmatprep.subr.bf16.mxu0 %v1220_v4  ;;  %v356_v18 = vld [vmem:[%s1530_s9 + $0x38] sm:$0xff]  ;;  %v854_v19 = vpack.c.bf16 %v451_v14, %v450_v13  ;;  %v453_v21 = vld [vmem:[%s1544_s23 + $0x28] sm:$0xff]  ;;  %v357_v23 = vld [vmem:[%s1530_s9 + $0x40] sm:$0xff] }
  0x9f   : > { %852 = vmatpush3.bf16.msra.mxu1 %v851_v16  ;;  %v836_v22 = vpack.c.bf16 %v356_v18, %v355_v17  ;;  %v358_v24 = vld [vmem:[%s1530_s9 + $0x48] sm:$0xff]  ;;  %v857_v25 = vpack.c.bf16 %v453_v21, %v452_v20  ;;  %v359_v27 = vld [vmem:[%s1530_s9 + $0x50] sm:$0xff]  ;;  %v360_v28 = vld [vmem:[%s1530_s9 + $0x58] sm:$0xff] }
  0xa0   : > { %853 = vmatprep.subr.bf16.mxu1 %v1220_v4  ;;  %v839_v26 = vpack.c.bf16 %v358_v24, %v357_v23  ;;  %v842_v29 = vpack.c.bf16 %v360_v28, %v359_v27  ;;  %v361_v30 = vld [vmem:[%s1530_s9 + $0x60] sm:$0xff]  ;;  %v362_v31 = vld [vmem:[%s1530_s9 + $0x68] sm:$0xff]  ;;  %v363_v33 = vld [vmem:[%s1530_s9 + $0x70] sm:$0xff] }
  0xa1   : > { %831 = vmatpush3.bf16.msra.mxu0 %v830_v8  ;;  %v845_v32 = vpack.c.bf16 %v362_v31, %v361_v30  ;;  %v364_v34 = vld [vmem:[%s1530_s9 + $0x78] sm:$0xff]  ;;  %v454_v37 = vld [vmem:[%s1544_s23 + $0x30] sm:$0xff]  ;;  %v456_v40 = vld [vmem:[%s1544_s23 + $0x40] sm:$0xff] }
  0xa2   : > { %832 = vmatprep.subr.bf16.mxu0 %v1220_v4  ;;  %v848_v35 = vpack.c.bf16 %v364_v34, %v363_v33  ;;  %v348_v36 = vld [vmem:[%s1522_s17] sm:$0xff]  ;;  %v457_v41 = vld [vmem:[%s1544_s23 + $0x48] sm:$0xff]  ;;  %v460_v46 = vld [vmem:[%s1544_s23 + $0x60] sm:$0xff] }
  0xa3   : > { %855 = vmatpush3.bf16.msra.mxu1 %v854_v19  ;;  %v455_v38 = vld [vmem:[%s1544_s23 + $0x38] sm:$0xff]  ;;  %v863_v42 = vpack.c.bf16 %v457_v41, %v456_v40  ;;  %v458_v43 = vld [vmem:[%s1544_s23 + $0x50] sm:$0xff]  ;;  %v461_v47 = vld [vmem:[%s1544_s23 + $0x68] sm:$0xff] }
  0xa4   : > { %856 = vmatprep.subr.bf16.mxu1 %v1220_v4  ;;  %v860_v39 = vpack.c.bf16 %v455_v38, %v454_v37  ;;  %v459_v44 = vld [vmem:[%s1544_s23 + $0x58] sm:$0xff]  ;;  %v869_v48 = vpack.c.bf16 %v461_v47, %v460_v46  ;;  %v462_v49 = vld [vmem:[%s1544_s23 + $0x70] sm:$0xff]  ;;  %v714_v52 = vld [vmem:[%s341_s30] ss:$0 sm:$0xff] }
  0xa5   : > { %834 = vmatpush3.bf16.msra.mxu0 %v833_v15  ;;  %v866_v45 = vpack.c.bf16 %v459_v44, %v458_v43  ;;  %v463_v50 = vld [vmem:[%s1544_s23 + $0x78] sm:$0xff]  ;;  %v447_v61 = vld [vmem:[#allocation2] sm:$0xff] }
  0xa6   : > { %835 = vmatprep.subr.bf16.mxu0 %v1220_v4  ;;  %v872_v51 = vpack.c.bf16 %v463_v50, %v462_v49  ;;  %v716_v2 = vld [vmem:[%s1719_s8] ss:$0 sm:$0xff] (!%p715_p0) }
  0xa7   : > { %858 = vmatpush3.bf16.msra.mxu1 %v857_v25 }
  0xa8   : > { %859 = vmatprep.subr.bf16.mxu1 %v1220_v4 }
  0xa9   : > { %837 = vmatpush3.bf16.msra.mxu0 %v836_v22 }
  0xaa   : > { %838 = vmatprep.subr.bf16.mxu0 %v1220_v4 }
  0xab   : > { %861 = vmatpush3.bf16.msra.mxu1 %v860_v39 }
  0xac   : > { %862 = vmatprep.subr.bf16.mxu1 %v1220_v4 }
  0xad   : > { %840 = vmatpush3.bf16.msra.mxu0 %v839_v26 }
  0xae   : > { %841 = vmatprep.subr.bf16.mxu0 %v1220_v4 }
  0xaf   : > { %864 = vmatpush3.bf16.msra.mxu1 %v863_v42 }
  0xb0   : > { %865 = vmatprep.subr.bf16.mxu1 %v1220_v4 }
  0xb1   : > { %843 = vmatpush3.bf16.msra.mxu0 %v842_v29 }
  0xb2   : > { %844 = vmatprep.subr.bf16.mxu0 %v1220_v4 }
  0xb3   : > { %867 = vmatpush3.bf16.msra.mxu1 %v866_v45 }
  0xb4   : > { %868 = vmatprep.subr.bf16.mxu1 %v1220_v4 }
  0xb5   : > { %846 = vmatpush3.bf16.msra.mxu0 %v845_v32 }
  0xb6   : > { %847 = vmatprep.subr.bf16.mxu0 %v1220_v4 }
  0xb7   : > { %870 = vmatpush3.bf16.msra.mxu1 %v869_v48 }
  0xb8   : > { %871 = vmatprep.subr.bf16.mxu1 %v1220_v4 }
  0xb9   : > { %849 = vmatpush3.bf16.msra.mxu0 %v848_v35 }
  0xbb   : > { %873 = vmatpush3.bf16.msra.mxu1 %v872_v51 }
  0xbc   : > { %789 = vmatmul.mubr.f32.vlgmr.msra.gmra.mrb[0].mxu0 %v348_v36 }
 0x18f   : > { %v438_v53 = vpop.f32.mrb[0].mxu0 }
 0x190   : > { %v439_v54 = vadd.f32 %v714_v52, %v438_v53  ;;  %v790_v55 = vpop.f32.mrb[1].mxu0 }
 0x192   : > { %v443_v56 = vmul.f32 0.70710677, %v439_v54  ;;  %v442_v58 = vmul.f32 0.5, %v439_v54 }
 0x194   : > { %993 = verf.f32 %v443_v56 }
 0x19e   : > { %v994_v57 = vpop.eup %993 }
 0x19f   : > { %v445_v59 = vadd.f32 1.0, %v994_v57 }
 0x1a1   : > { %v446_v60 = vmul.f32 %v445_v59, %v442_v58 }
 0x1a3   : > { %824 = vmatmul.mubr.f32.vlgmr.msra.gmra.mrb[0].mxu1 %v446_v60 }
 0x273   : > { %539 = sbr.rel (%p715_p0) target bundleno = 644 (0x284), region = 60 }
 0x276   : > { %v530_v62 = vpop.f32.mrb[0].mxu1 }
 0x277   : > { %v534_v63 = vadd.f32 %v530_v62, %v447_v61  ;;  %v825_v0 = vpop.f32.mrb[1].mxu1 }
 0x279   : > { %535 = vst [vmem:[#allocation2] sm:$0xff] %v534_v63 }
 0x280   : > { %v540_v1 = vld [vmem:[#allocation2] sm:$0xff] }
 0x281   : > { %v548_v3 = vadd.f32 %v716_v2, %v540_v1 }
 0x283   : > { %549 = vst [vmem:[%s1546_s18] sm:$0xff] %v548_v3 }
 0x284 PF: > { %s1720_s17 = sld [smem:[#allocation14_spill]]  ;;  %s1721_s4 = sld [smem:[#allocation23_spill]] }
 0x285   : > { %s564_s24 = sshll.u32 %s1546_s18, 4  ;;  %s551_s1 = scalar_lea.sflag [#allocation5], %s1518_s13  ;;  %s565_s24 = int_to_ptr.vmem [resolvable:$true] %s564_s24 }
 0x286   : > { %s1085_s7 = scalar_lea.vmem %s565_s24, 128  ;;  %p1722_p13 = scmp.ne.s32.totalorder %s1706_s5, 0 }
 0x287   : > { %p1086_p3 = scmp.ne.s32.totalorder %s565_s24, %s1085_s7  ;;  %s1223_s25 = smov [#allocation9]  }
 0x288   : > { %s1089_s11 = sshll.u32 %s1223_s25, 4  ;;  %s1090_s11 = int_to_ptr.vmem [resolvable:$false] %s1089_s11 }
 0x289   : > { %p1087_p9 = pnand %p1086_p3, %p1722_p13  ;;  %s1091_s30 = scalar_lea.vmem %s1090_s11, 256 }
 0x28a   : > { %s718_s12 = sshll.u32 %s1720_s17, 7  ;;  %p1092_p11 = scmp.lt.s32.totalorder %s565_s24, %s1090_s11 }
 0x28b   : > { %s1612_s9 = scalar_lea.hbm %s1721_s4, %s718_s12  ;;  %p1088_p12 = pneg %p1087_p9 }
 0x28c   : > { %p1093_p2 = scmp.lt.s32.totalorder %s1091_s30, %s1085_s7 }
 0x28e   : > { %p1094_p1 = por %p1093_p2, %p1092_p11 }
 0x290   : > { %p1095_p5 = pnand %p1094_p1, %p1088_p12 }
 0x292   : > { %1098 = shalt.err (!%p1095_p5)
}
 0x293   : > { %s1099_s13 = scalar_lea.hbm %s1612_s9, 128  ;;  %s1103_s29 = scalar_lea.hbm %s1721_s4, 256 }
 0x294   : > { %p1100_p7 = scmp.ne.s32.totalorder %s1612_s9, %s1099_s13  ;;  %p1104_p10 = scmp.lt.u32.totalorder %s1612_s9, %s1721_s4 }
 0x295   : > { %p1105_p6 = scmp.lt.u32.totalorder %s1103_s29, %s1099_s13  ;;  %p1107_p3 = scmp.lt.u32.totalorder %s1099_s13, %s1612_s9 }
 0x296   : > { %p1101_p8 = pnand %p1100_p7, %p1722_p13 }
 0x297   : > { %p1106_p0 = por %p1105_p6, %p1104_p10 }
 0x298   : > { %p1102_p4 = pneg %p1101_p8 }
 0x299   : > { %p1108_p9 = por %p1107_p3, %p1106_p0 }
 0x29b   : > { %p1109_p12 = pnand %p1108_p9, %p1102_p4 }
 0x29d   : > { %1112 = shalt.err (!%p1109_p12)
}
 0x29e   : > { %880 = dma.vmem_to_hbm [thread:$0]  (%p1722_p13), %s565_s24, 128, %s1612_s9, %s551_s1  }
 0x29f PF: > { %p897_p11 = scmp.ge.s32.totalorder %s1211_s28, 2  ;;  %s576_s16 = sand.u32 1, %s1183_s21  }
 0x2a0   : > { %p1723_p2 = scmp.ne.s32.totalorder %s1707_s6, 0  ;;  %s577_s27 = scalar_lea.sflag [#allocation5], %s576_s16 }
 0x2a2   : > { %p893_p1 = pnand %p897_p11, %p1723_p2 }
 0x2a4   : > { %1166 = dma.done.wait (!%p893_p1), %s577_s27, 128  }
 0x2a5   : > { %1168 = vsyncadd (!%p893_p1), %s577_s27, 4294967168  ;;  %s24_s28 = sadd.s32 1, %s1211_s28   ;;  %s1724_s8 = sld [smem:[#allocation18_spill]] }
 0x2a6   : > { %p21_p5 = scmp.ge.s32.totalorder %s24_s28, 6   ;;  %s1725_s5 = sld [smem:[#allocation13_spill]] }
 0x2a7   : > { %s1726_s23 = sld [smem:[#allocation19_spill]]  ;;  %s1727_s25 = sld [smem:[#allocation15_spill]] }
 0x2a8   : > { %s1728_s17 = sld [smem:[#allocation16_spill]]  ;;  %s1729_s27 = sld [smem:[#allocation17_spill]] }
 0x2a9   : > { %s1730_s18 = smov %s1175_s19  ;;  %s1731_s19 = smov %s1179_s20 }
 0x2aa   : > { %s1733_s21 = smov %s1187_s22  ;;  %s1735_s24 = smov %s1203_s26 }
 0x2ab   : > { %s1732_s20 = smov %s1724_s8  ;;  %23 = sbr.rel (!%p21_p5) target bundleno = 16 (0x10), region = 120 }
 0x2ac   : > { %s1734_s22 = smov %s1725_s5 }
 0x2ae   : > { %s1736_s26 = smov %s1728_s17 }
 0x2b2   :  { %582 = vsyncpa [#allocation4], 1 }
 0x2b3   :  { %584 = vsyncpa [#allocation4 + $0x1], 1 }
 0x2b4   :  { %585 = vsyncpa [#allocation7], 1 }
 0x2b5   :  { %587 = vsyncpa [#allocation7 + $0x1], 1 }
 0x2b6   :  { %588 = vsyncpa [#allocation5], 1 }
 0x2b7   :  { %590 = vsyncpa [#allocation5 + $0x1], 1 }

// kernel: tpu_custom_call.1
= control target key start
LH: loop header
LB: loop body
LE: loop exit
PB: predicated region body
PF: predicated region fallthrough
CT: control target
= control target key end

     0   :  { %s1670_s0 = inlined_call_operand.hbm [shape: f32[16,128], index: 0, kind: input, shape index: {}]   ;;  %s1671_s1 = inlined_call_operand.hbm [shape: f32[128,256], index: 1, kind: input, shape index: {}]   ;;  %s1672_s2 = inlined_call_operand.vmem [shape: f32[1,256], index: 2, kind: input, shape index: {}]   ;;  %s1673_s3 = inlined_call_operand.hbm [shape: f32[256,128], index: 3, kind: input, shape index: {}]   ;;  %s1674_s4 = inlined_call_operand.vmem [shape: f32[1,128], index: 4, kind: input, shape index: {}]   ;;  %s1675_s5 = inlined_call_operand.hbm [shape: f32[16,128], index: 5, kind: output, shape index: {}]  }
   0x1   :  { %1688 = sst [smem:[#allocation20_spill]] %s1671_s1 }
   0x2   :  { %1689 = sst [smem:[#allocation21_spill]] %s1672_s2 }
   0x3   :  { %1690 = sst [smem:[#allocation22_spill]] %s1674_s4 }
   0x4   :  { %1691 = sst [smem:[#allocation23_spill]] %s1675_s5 }
   0x5   :  { %10 = vsyncpa [#allocation4], 0 }
   0x6   :  { %12 = vsyncpa [#allocation4 + $0x1], 0 }
   0x7   :  { %13 = vsyncpa [#allocation7], 0 }
   0x8   :  { %15 = vsyncpa [#allocation7 + $0x1], 0 }
   0x9   :  { %16 = vsyncpa [#allocation5], 0 }
   0xa   :  { %18 = vsyncpa [#allocation5 + $0x1], 0  ;;  %s1254_s18 = smov 0   ;;  %s1256_s19 = smov 0  }
   0xb   :  { %s1258_s20 = smov 0   ;;  %s1260_s21 = smov 0  }
   0xc   :  { %s1262_s22 = smov 0   ;;  %s1264_s23 = smov 0  }
   0xd   :  { %s1266_s24 = smov 0   ;;  %s1268_s25 = smov 0  }
   0xe   :  { %s1270_s26 = smov 0   ;;  %s1272_s27 = smov 0  }
   0xf   :  { %s1274_s28 = smov 0  }
  0x10 LB: > { %1692 = sst [smem:[#allocation13_spill]] %s1191_s23  ;;  %p51_p0 = scmp.eq.s32.totalorder %s1211_s28, 0  ;;  %s1211_s28 = sphi %s1274_s28, %s24_s28   ;;  %s1207_s27 = sphi %s1272_s27, %s1729_s27   ;;  %s1203_s26 = sphi %s1270_s26, %s1736_s26   ;;  %s1199_s25 = sphi %s1268_s25, %s1727_s25   ;;  %s1195_s24 = sphi %s1266_s24, %s1735_s24   ;;  %s1191_s23 = sphi %s1264_s23, %s1726_s23   ;;  %s1187_s22 = sphi %s1262_s22, %s1734_s22   ;;  %s1183_s21 = sphi %s1260_s21, %s1733_s21   ;;  %s1179_s20 = sphi %s1258_s20, %s1732_s20   ;;  %s1175_s19 = sphi %s1256_s19, %s1731_s19   ;;  %s1171_s18 = sphi %s1254_s18, %s1730_s18  }
  0x11   : > { %1693 = sst [smem:[#allocation14_spill]] %s1199_s25  ;;  %p76_p1 = scmp.ne.s32.totalorder %s1179_s20, %s1175_s19 }
  0x12   : > { %1694 = sst [smem:[#allocation15_spill]] %s1207_s27  ;;  %p1676_p2 = scmp.lt.s32.totalorder %s1211_s28, 4 }
  0x13   : > { %s226_s30 = sand.u32 1, %s1211_s28   ;;  %p78_p3 = por %p76_p1, %p51_p0 }
  0x14   : > { %s228_s6 = sand.u32 1, %s1179_s20   ;;  %s704_s7 = sshll.u32 %s1203_s26, 7 }
  0x15   : > { %s1319_s8 = sshll.u32 %s228_s6, 7  ;;  %s1695_s1 = sld [smem:[#allocation20_spill]] }
  0x16   : > { %p1328_p4 = pnand %p1676_p2, %p78_p3  ;;  %s230_s13 = scalar_lea.vmem [#allocation6], %s1319_s8 }
  0x17   : > { %s236_s14 = sshll.u32 %s230_s13, 4  ;;  %s1335_s15 = scalar_lea.sflag [#allocation7], %s226_s30  ;;  %s1333_s14 = int_to_ptr.vmem [resolvable:$true] %s236_s14 }
  0x18   : > { %p1681_p6 = pneg %p1328_p4 }
  0x1b   : > { %s1324_s11 = scalar_lea.hbm %s1695_s1, %s704_s7  ;;  %s1000_s7 = scalar_lea.hbm %s1695_s1, 4096 }
  0x1c   : > { %s995_s16 = scalar_lea.hbm %s1324_s11, 2048  ;;  %p1001_p9 = scmp.lt.u32.totalorder %s1324_s11, %s1695_s1 }
  0x1d   : > { %p996_p5 = scmp.ne.s32.totalorder %s1324_s11, %s995_s16  ;;  %p1002_p10 = scmp.lt.u32.totalorder %s1000_s7, %s995_s16 }
  0x1e   : > { %p1004_p12 = scmp.lt.u32.totalorder %s995_s16, %s1324_s11 }
  0x1f   : > { %p998_p7 = pnand %p1681_p6, %p996_p5  ;;  %p1003_p11 = por %p1002_p10, %p1001_p9 }
  0x21   : > { %p999_p8 = pneg %p998_p7  ;;  %p1005_p13 = por %p1004_p12, %p1003_p11 }
  0x23   : > { %p1006_p1 = pnand %p1005_p13, %p999_p8 }
  0x25   : > { %1009 = shalt.err (!%p1006_p1)
}
  0x26   : > { %s1010_s30 = scalar_lea.vmem %s1333_s14, 2048  ;;  %s1213_s13 = smov [#allocation6]  }
  0x27   : > { %p1011_p3 = scmp.ne.s32.totalorder %s1333_s14, %s1010_s30  ;;  %s1015_s17 = sshll.u32 %s1213_s13, 4  ;;  %s1016_s17 = int_to_ptr.vmem [resolvable:$false] %s1015_s17 }
  0x28   : > { %s1017_s6 = scalar_lea.vmem %s1016_s17, 4096  ;;  %p1018_p2 = scmp.lt.s32.totalorder %s1333_s14, %s1016_s17 }
  0x29   : > { %p1013_p5 = pnand %p1011_p3, %p1681_p6  ;;  %p1019_p9 = scmp.lt.s32.totalorder %s1017_s6, %s1010_s30 }
  0x2b   : > { %p1014_p7 = pneg %p1013_p5  ;;  %p1020_p10 = por %p1019_p9, %p1018_p2 }
  0x2d   : > { %p1021_p11 = pnand %p1020_p10, %p1014_p7 }
  0x2f   : > { %1024 = shalt.err (!%p1021_p11)
}
  0x30   : > { %s1214_s16 = smov 256   ;;  %s1677_s7 = smov 128  }
  0x31   : > { %s1678_s9 = smov 8   ;;  %p708_p2 = scmp.ge.s32.totalorder %s1211_s28, 1 }
  0x32   : > { %888 = dma.hbm_to_vmem [thread:$0]  (!%p1328_p4), %s1324_s11, 2048, %s1333_s14, %s1335_s15, %s1214_s16, %s1677_s7, %s1678_s9  }
  0x33   : > { %p271_p8 = scmp.lt.s32.totalorder %s1211_s28, 5  ;;  %s1372_s30 = sadd.s32 4294967295, %s1211_s28  }
  0x34   : > { %s698_s13 = sadd.s32 4294967294, %s1211_s28   ;;  %s33_s17 = sadd.s32 1, %s1203_s26 }
  0x35   : > { %p1367_p12 = pnand %p708_p2, %p271_p8  ;;  %p34_p13 = scmp.ge.s32.totalorder %s33_s17, 2 }
  0x36   : > { %s36_s6 = sadd.s32 1, %s1207_s27  ;;  %s43_s11 = sadd.s32 1, %s1191_s23 }
  0x37   : > { %s1697_s10 = scalar_select %p1367_p12, 1, 0 }
  0x38   : > { %p50_p1 = scmp.ne.s32.totalorder %s1191_s23, %s1187_s22  ;;  %s1738_s17 = smov (%p34_p13, %s33_s17), 0 }
  0x39   : > { %1698 = sst [smem:[#allocation16_spill]] %s1738_s17  ;;  %s1740_s6 = smov (!%p34_p13, %s36_s6), %s1207_s27 }
  0x3a   : > { %p1388_p3 = por %p51_p0, %p50_p1  ;;  %p56_p5 = scmp.ne.s32.totalorder %s1187_s22, %s1183_s21 }
  0x3b   : > { %p38_p7 = scmp.ge.s32.totalorder %s1740_s6, 2  ;;  %p57_p9 = scmp.eq.s32.totalorder %s1372_s30, 0 }
  0x3c   : > { %s66_s16 = ssub.s32 %s1203_s26, %s1738_s17  ;;  %p82_p10 = scmp.ne.s32.totalorder %s1175_s19, %s1171_s18 }
  0x3d   : > { %s1742_s6 = smov (%p38_p7, %s1740_s6), 0  ;;  %p1404_p11 = por %p57_p9, %p56_p5 }
  0x3e   : > { %1700 = sst [smem:[#allocation17_spill]] %s1742_s6  ;;  %p67_p0 = scmp.eq.s32.totalorder %s66_s16, 0 }
  0x3f   : > { %s1701_s7 = scalar_select %p1404_p11, 1, 0 }
  0x40   : > { %s40_s9 = ssub.s32 %s1207_s27, %s1742_s6  ;;  %p1410_p2 = por %p82_p10, %p57_p9 }
  0x41   : > { %p41_p8 = scmp.eq.s32.totalorder %s40_s9, 0  ;;  %p179_p13 = scmp.eq.s32.totalorder %s1372_s30, 3 }
  0x42   : > { %s1702_s29 = scalar_select %p1410_p2, 1, 0 }
  0x43   : > { %s1703_s1 = sadd.s32 1, %s1179_s20  ;;  %p1426_p7 = por %p179_p13, %p50_p1 }
  0x44   : > { %s1418_s18 = scalar_select %p67_p0, %s1179_s20, %s1703_s1  }
  0x45   : > { %s1421_s17 = scalar_select %p41_p8, %s1191_s23, %s43_s11  }
  0x46   : > { %1704 = sst [smem:[#allocation18_spill]] %s1418_s18  ;;  %p185_p6 = scmp.eq.s32.totalorder %s698_s13, 3 }
  0x47   : > { %1705 = sst [smem:[#allocation19_spill]] %s1421_s17  ;;  %s208_s25 = sand.u32 1, %s1191_s23  }
  0x48   : > { %s1706_s5 = scalar_select %p1426_p7, 1, 0 }
  0x49   : > { %s702_s16 = sshll.u32 %s1207_s27, 7  ;;  %p1435_p9 = por %p185_p6, %p56_p5 }
  0x4a   : > { %s701_s9 = sshll.u32 %s208_s25, 3  ;;  %s1442_s1 = scalar_lea.hbm %s1670_s0, %s702_s16 }
  0x4b   : > { %s1707_s6 = scalar_select %p1435_p9, 1, 0 }
  0x4c   : > { %p1708_p10 = scmp.lt.s32.totalorder %s1211_s28, 4  ;;  %s212_s11 = scalar_lea.vmem [#allocation3], %s701_s9 }
  0x4d   : > { %s219_s27 = sshll.u32 %s212_s11, 4  ;;  %s209_s17 = scalar_lea.sflag [#allocation4], %s208_s25  ;;  %s1452_s27 = int_to_ptr.vmem [resolvable:$true] %s219_s27 }
  0x4e   : > { %p1448_p1 = pnand %p1708_p10, %p1388_p3  ;;  %s1025_s2 = scalar_lea.hbm %s1442_s1, 128 }
  0x4f   : > { %p1026_p6 = scmp.ne.s32.totalorder %s1442_s1, %s1025_s2  ;;  %s1030_s16 = scalar_lea.hbm %s1670_s0, 256 }
  0x50   : > { %p1027_p5 = pneg %p1448_p1  ;;  %p1031_p3 = scmp.lt.u32.totalorder %s1442_s1, %s1670_s0 }
  0x51   : > { %p1032_p13 = scmp.lt.u32.totalorder %s1030_s16, %s1025_s2  ;;  %p1034_p9 = scmp.lt.u32.totalorder %s1025_s2, %s1442_s1 }
  0x52   : > { %p1028_p0 = pnand %p1027_p5, %p1026_p6 }
  0x53   : > { %p1033_p10 = por %p1032_p13, %p1031_p3 }
  0x54   : > { %p1029_p8 = pneg %p1028_p0 }
  0x55   : > { %p1035_p7 = por %p1034_p9, %p1033_p10 }
  0x57   : > { %p1036_p2 = pnand %p1035_p7, %p1029_p8 }
  0x59   : > { %1039 = shalt.err (!%p1036_p2)
}
  0x5a   : > { %s1040_s25 = scalar_lea.vmem %s1452_s27, 128  ;;  %s1217_s9 = smov [#allocation3]  }
  0x5b   : > { %p1041_p6 = scmp.ne.s32.totalorder %s1452_s27, %s1040_s25  ;;  %s1045_s11 = sshll.u32 %s1217_s9, 4  ;;  %s1046_s11 = int_to_ptr.vmem [resolvable:$false] %s1045_s11 }
  0x5c   : > { %s1047_s23 = scalar_lea.vmem %s1046_s11, 256  ;;  %p1048_p12 = scmp.lt.s32.totalorder %s1452_s27, %s1046_s11 }
  0x5d   : > { %p1043_p0 = pnand %p1041_p6, %p1027_p5  ;;  %p1049_p3 = scmp.lt.s32.totalorder %s1047_s23, %s1040_s25 }
  0x5f   : > { %p1044_p11 = pneg %p1043_p0  ;;  %p1050_p13 = por %p1049_p3, %p1048_p12 }
  0x61   : > { %p1051_p9 = pnand %p1050_p13, %p1044_p11 }
  0x63   : > { %1054 = shalt.err (!%p1051_p9)
}
  0x64   : > { %885 = dma.hbm_to_vmem [thread:$0]  (!%p1448_p1), %s1442_s1, 128, %s1452_s27, %s209_s17  }
  0x65   : > { %s721_s18 = sshll.u32 %s1203_s26, 11  ;;  %s256_s2 = scalar_lea.vmem [#allocation8], %s1319_s8 }
  0x66   : > { %s263_s4 = sshll.u32 %s256_s2, 4  ;;  %s1484_s9 = scalar_lea.hbm %s1673_s3, %s721_s18  ;;  %s1486_s4 = int_to_ptr.vmem [resolvable:$true] %s263_s4 }
  0x67   : > { %s1055_s13 = scalar_lea.hbm %s1484_s9, 2048  ;;  %p1710_p11 = pneg %p1328_p4 }
  0x68   : > { %p1056_p12 = scmp.ne.s32.totalorder %s1484_s9, %s1055_s13  ;;  %s1060_s17 = scalar_lea.hbm %s1673_s3, 4096 }
  0x69   : > { %p1061_p1 = scmp.lt.u32.totalorder %s1484_s9, %s1673_s3  ;;  %p1062_p5 = scmp.lt.u32.totalorder %s1060_s17, %s1055_s13 }
  0x6a   : > { %p1058_p2 = pnand %p1056_p12, %p1710_p11  ;;  %p1064_p10 = scmp.lt.u32.totalorder %s1055_s13, %s1484_s9 }
  0x6b   : > { %p1063_p8 = por %p1062_p5, %p1061_p1 }
  0x6c   : > { %p1059_p7 = pneg %p1058_p2 }
  0x6d   : > { %p1065_p6 = por %p1064_p10, %p1063_p8 }
  0x6f   : > { %p1066_p0 = pnand %p1065_p6, %p1059_p7 }
  0x71   : > { %1069 = shalt.err (!%p1066_p0)
}
  0x72   : > { %s1070_s11 = scalar_lea.vmem %s1486_s4, 2048  ;;  %p1711_p13 = pmov %p1710_p11 }
  0x73   : > { %p1071_p3 = scmp.ne.s32.totalorder %s1486_s4, %s1070_s11  ;;  %s1218_s23 = smov [#allocation8]  }
  0x74   : > { %s1075_s18 = sshll.u32 %s1218_s23, 4  ;;  %s1076_s18 = int_to_ptr.vmem [resolvable:$false] %s1075_s18 }
  0x75   : > { %p1073_p9 = pnand %p1071_p3, %p1711_p13  ;;  %s1077_s2 = scalar_lea.vmem %s1076_s18, 4096 }
  0x76   : > { %p1078_p11 = scmp.lt.s32.totalorder %s1486_s4, %s1076_s18  ;;  %p1079_p2 = scmp.lt.s32.totalorder %s1077_s2, %s1070_s11 }
  0x77   : > { %p1074_p12 = pneg %p1073_p9 }
  0x78   : > { %p1080_p1 = por %p1079_p2, %p1078_p11 }
  0x7a   : > { %p1081_p5 = pnand %p1080_p1, %p1074_p12 }
  0x7c   : > { %1084 = shalt.err (!%p1081_p5)
}
  0x7d   : > { %s1712_s14 = smov 8   ;;  %s1713_s16 = smov 128  }
  0x7e   : > { %891 = dma.hbm_to_vmem [thread:$0]  (!%p1328_p4), %s1484_s9, 2048, %s1486_s4, %s1335_s15, %s1713_s16, %s1713_s16, %s1712_s14  }
  0x7f   : > { %p1714_p7 = scmp.ne.s32.totalorder %s1697_s10, 0 }
  0x80   : > { %s1518_s13 = sand.u32 (!%p1714_p7), 1, %s1187_s22   ;;  %p1715_p8 = scmp.ne.s32.totalorder (!%p1714_p7), %s1701_s7, 0 }
  0x81   : > { %275 = sbr.rel (%p1714_p7) target bundleno = 671 (0x29f), region = 40  ;;  %s709_s27 = sshll.u32 (!%p1714_p7), %s1518_s13, 3 }
  0x82   : > { %s278_s8 = scalar_lea.sflag (!%p1714_p7), [#allocation4], %s1518_s13  ;;  %s1522_s17 = scalar_lea.vmem (!%p1714_p7), [#allocation3], %s709_s27 }
  0x88   : > { %1158 = dma.done.wait (%p1715_p8), %s278_s8, 128  }
  0x89   : > { %1160 = vsyncadd (%p1715_p8), %s278_s8, 4294967168  ;;  %s286_s12 = sand.u32 1, %s1372_s30   ;;  %s288_s15 = sand.u32 1, %s1175_s19  }
  0x8a   : > { %s710_s10 = sshll.u32 %s288_s15, 7  ;;  %s287_s4 = scalar_lea.sflag [#allocation7], %s286_s12 }
  0x8b   : > { %s1530_s9 = scalar_lea.vmem [#allocation6], %s710_s10  ;;  %p1716_p4 = scmp.ne.s32.totalorder %s1702_s29, 0 }
  0x8d   : > { %1162 = dma.done.wait (%p1716_p4), %s287_s4, 4096  }
  0x8e   : > { %1164 = vsyncadd (%p1716_p4), %s287_s4, 4294963200  ;;  %p339_p10 = scmp.lt.s32.totalorder %s1195_s24, 1  ;;  %s1717_s11 = sld [smem:[#allocation21_spill]] }
  0x8f   : > { %s1544_s23 = scalar_lea.vmem [#allocation8], %s710_s10  ;;  %s1546_s18 = scalar_lea.vmem [#allocation9], %s709_s27 }
  0x90   : > { %s1538_s1 = scalar_select %p339_p10, %s1195_s24, 1 }
  0x91   : > { %p713_p6 = scmp.ne.s32.totalorder %s1195_s24, 0 }
  0x92   : > { %v1219_v0 = vmov (!%p713_p6), 0.0  }
  0x93   : > { %346 = sbr.rel (%p713_p6) target bundleno = 154 (0x9a), region = 56  ;;  %347 = vst [vmem:[#allocation2] sm:$0xff] (!%p713_p6), %v1219_v0 }
  0x94   : > { %s341_s30 = scalar_lea.vmem %s1717_s11, %s1538_s1 }
  0x9a PF: > { %v349_v1 = vld [vmem:[%s1530_s9] sm:$0xff]  ;;  %v350_v2 = vld [vmem:[%s1530_s9 + $0x8] sm:$0xff]  ;;  %v351_v3 = vld [vmem:[%s1530_s9 + $0x10] sm:$0xff]  ;;  %v1220_v4 = vmov 0.0|0.0   ;;  %vm1221_vm0 = vmmov 0   ;;  %v1222_v7 = vmov 0.0  }
  0x9b   : > { %826 = vmatprep.subr.bf16.mxu0 %v1220_v4  ;;  %v827_v5 = vpack.c.bf16 %v350_v2, %v349_v1  ;;  %v352_v6 = vld [vmem:[%s1530_s9 + $0x18] sm:$0xff]  ;;  %788 = vmatprep.mubr.msk.f32.mxu0 %vm1221_vm0, %v1222_v7  ;;  %v353_v9 = vld [vmem:[%s1530_s9 + $0x20] sm:$0xff]  ;;  %v354_v10 = vld [vmem:[%s1530_s9 + $0x28] sm:$0xff]  ;;  %p715_p0 = scmp.ne.s32.totalorder %s1195_s24, 1 }
  0x9c   : > { %850 = vmatprep.subr.bf16.mxu1 %v1220_v4  ;;  %823 = vmatprep.mubr.msk.f32.mxu1 %vm1221_vm0, %v1222_v7  ;;  %v830_v8 = vpack.c.bf16 %v352_v6, %v351_v3  ;;  %v448_v11 = vld [vmem:[%s1544_s23] sm:$0xff]  ;;  %v449_v12 = vld [vmem:[%s1544_s23 + $0x8] sm:$0xff]  ;;  %v450_v13 = vld [vmem:[%s1544_s23 + $0x10] sm:$0xff]  ;;  %v833_v15 = vpack.c.bf16 %v354_v10, %v353_v9  ;;  %s1719_s8 = sld [smem:[#allocation22_spill]] (!%p715_p0) }
  0x9d   : > { %828 = vmatpush3.bf16.msra.mxu0 %v827_v5  ;;  %v451_v14 = vld [vmem:[%s1544_s23 + $0x18] sm:$0xff]  ;;  %v851_v16 = vpack.c.bf16 %v449_v12, %v448_v11  ;;  %v355_v17 = vld [vmem:[%s1530_s9 + $0x30] sm:$0xff]  ;;  %v452_v20 = vld [vmem:[%s1544_s23 + $0x20] sm:$0xff] }
  0x9e   : > { %829 = vmatprep.subr.bf16.mxu0 %v1220_v4  ;;  %v356_v18 = vld [vmem:[%s1530_s9 + $0x38] sm:$0xff]  ;;  %v854_v19 = vpack.c.bf16 %v451_v14, %v450_v13  ;;  %v453_v21 = vld [vmem:[%s1544_s23 + $0x28] sm:$0xff]  ;;  %v357_v23 = vld [vmem:[%s1530_s9 + $0x40] sm:$0xff] }
  0x9f   : > { %852 = vmatpush3.bf16.msra.mxu1 %v851_v16  ;;  %v836_v22 = vpack.c.bf16 %v356_v18, %v355_v17  ;;  %v358_v24 = vld [vmem:[%s1530_s9 + $0x48] sm:$0xff]  ;;  %v857_v25 = vpack.c.bf16 %v453_v21, %v452_v20  ;;  %v359_v27 = vld [vmem:[%s1530_s9 + $0x50] sm:$0xff]  ;;  %v360_v28 = vld [vmem:[%s1530_s9 + $0x58] sm:$0xff] }
  0xa0   : > { %853 = vmatprep.subr.bf16.mxu1 %v1220_v4  ;;  %v839_v26 = vpack.c.bf16 %v358_v24, %v357_v23  ;;  %v842_v29 = vpack.c.bf16 %v360_v28, %v359_v27  ;;  %v361_v30 = vld [vmem:[%s1530_s9 + $0x60] sm:$0xff]  ;;  %v362_v31 = vld [vmem:[%s1530_s9 + $0x68] sm:$0xff]  ;;  %v363_v33 = vld [vmem:[%s1530_s9 + $0x70] sm:$0xff] }
  0xa1   : > { %831 = vmatpush3.bf16.msra.mxu0 %v830_v8  ;;  %v845_v32 = vpack.c.bf16 %v362_v31, %v361_v30  ;;  %v364_v34 = vld [vmem:[%s1530_s9 + $0x78] sm:$0xff]  ;;  %v454_v37 = vld [vmem:[%s1544_s23 + $0x30] sm:$0xff]  ;;  %v456_v40 = vld [vmem:[%s1544_s23 + $0x40] sm:$0xff] }
  0xa2   : > { %832 = vmatprep.subr.bf16.mxu0 %v1220_v4  ;;  %v848_v35 = vpack.c.bf16 %v364_v34, %v363_v33  ;;  %v348_v36 = vld [vmem:[%s1522_s17] sm:$0xff]  ;;  %v457_v41 = vld [vmem:[%s1544_s23 + $0x48] sm:$0xff]  ;;  %v460_v46 = vld [vmem:[%s1544_s23 + $0x60] sm:$0xff] }
  0xa3   : > { %855 = vmatpush3.bf16.msra.mxu1 %v854_v19  ;;  %v455_v38 = vld [vmem:[%s1544_s23 + $0x38] sm:$0xff]  ;;  %v863_v42 = vpack.c.bf16 %v457_v41, %v456_v40  ;;  %v458_v43 = vld [vmem:[%s1544_s23 + $0x50] sm:$0xff]  ;;  %v461_v47 = vld [vmem:[%s1544_s23 + $0x68] sm:$0xff] }
  0xa4   : > { %856 = vmatprep.subr.bf16.mxu1 %v1220_v4  ;;  %v860_v39 = vpack.c.bf16 %v455_v38, %v454_v37  ;;  %v459_v44 = vld [vmem:[%s1544_s23 + $0x58] sm:$0xff]  ;;  %v869_v48 = vpack.c.bf16 %v461_v47, %v460_v46  ;;  %v462_v49 = vld [vmem:[%s1544_s23 + $0x70] sm:$0xff]  ;;  %v714_v52 = vld [vmem:[%s341_s30] ss:$0 sm:$0xff] }
  0xa5   : > { %834 = vmatpush3.bf16.msra.mxu0 %v833_v15  ;;  %v866_v45 = vpack.c.bf16 %v459_v44, %v458_v43  ;;  %v463_v50 = vld [vmem:[%s1544_s23 + $0x78] sm:$0xff]  ;;  %v447_v61 = vld [vmem:[#allocation2] sm:$0xff] }
  0xa6   : > { %835 = vmatprep.subr.bf16.mxu0 %v1220_v4  ;;  %v872_v51 = vpack.c.bf16 %v463_v50, %v462_v49  ;;  %v716_v2 = vld [vmem:[%s1719_s8] ss:$0 sm:$0xff] (!%p715_p0) }
  0xa7   : > { %858 = vmatpush3.bf16.msra.mxu1 %v857_v25 }
  0xa8   : > { %859 = vmatprep.subr.bf16.mxu1 %v1220_v4 }
  0xa9   : > { %837 = vmatpush3.bf16.msra.mxu0 %v836_v22 }
  0xaa   : > { %838 = vmatprep.subr.bf16.mxu0 %v1220_v4 }
  0xab   : > { %861 = vmatpush3.bf16.msra.mxu1 %v860_v39 }
  0xac   : > { %862 = vmatprep.subr.bf16.mxu1 %v1220_v4 }
  0xad   : > { %840 = vmatpush3.bf16.msra.mxu0 %v839_v26 }
  0xae   : > { %841 = vmatprep.subr.bf16.mxu0 %v1220_v4 }
  0xaf   : > { %864 = vmatpush3.bf16.msra.mxu1 %v863_v42 }
  0xb0   : > { %865 = vmatprep.subr.bf16.mxu1 %v1220_v4 }
  0xb1   : > { %843 = vmatpush3.bf16.msra.mxu0 %v842_v29 }
  0xb2   : > { %844 = vmatprep.subr.bf16.mxu0 %v1220_v4 }
  0xb3   : > { %867 = vmatpush3.bf16.msra.mxu1 %v866_v45 }
  0xb4   : > { %868 = vmatprep.subr.bf16.mxu1 %v1220_v4 }
  0xb5   : > { %846 = vmatpush3.bf16.msra.mxu0 %v845_v32 }
  0xb6   : > { %847 = vmatprep.subr.bf16.mxu0 %v1220_v4 }
  0xb7   : > { %870 = vmatpush3.bf16.msra.mxu1 %v869_v48 }
  0xb8   : > { %871 = vmatprep.subr.bf16.mxu1 %v1220_v4 }
  0xb9   : > { %849 = vmatpush3.bf16.msra.mxu0 %v848_v35 }
  0xbb   : > { %873 = vmatpush3.bf16.msra.mxu1 %v872_v51 }
  0xbc   : > { %789 = vmatmul.mubr.f32.vlgmr.msra.gmra.mrb[0].mxu0 %v348_v36 }
 0x18f   : > { %v438_v53 = vpop.f32.mrb[0].mxu0 }
 0x190   : > { %v439_v54 = vadd.f32 %v714_v52, %v438_v53  ;;  %v790_v55 = vpop.f32.mrb[1].mxu0 }
 0x192   : > { %v443_v56 = vmul.f32 0.70710677, %v439_v54  ;;  %v442_v58 = vmul.f32 0.5, %v439_v54 }
 0x194   : > { %993 = verf.f32 %v443_v56 }
 0x19e   : > { %v994_v57 = vpop.eup %993 }
 0x19f   : > { %v445_v59 = vadd.f32 1.0, %v994_v57 }
 0x1a1   : > { %v446_v60 = vmul.f32 %v445_v59, %v442_v58 }
 0x1a3   : > { %824 = vmatmul.mubr.f32.vlgmr.msra.gmra.mrb[0].mxu1 %v446_v60 }
 0x273   : > { %539 = sbr.rel (%p715_p0) target bundleno = 644 (0x284), region = 60 }
 0x276   : > { %v530_v62 = vpop.f32.mrb[0].mxu1 }
 0x277   : > { %v534_v63 = vadd.f32 %v530_v62, %v447_v61  ;;  %v825_v0 = vpop.f32.mrb[1].mxu1 }
 0x279   : > { %535 = vst [vmem:[#allocation2] sm:$0xff] %v534_v63 }
 0x280   : > { %v540_v1 = vld [vmem:[#allocation2] sm:$0xff] }
 0x281   : > { %v548_v3 = vadd.f32 %v716_v2, %v540_v1 }
 0x283   : > { %549 = vst [vmem:[%s1546_s18] sm:$0xff] %v548_v3 }
 0x284 PF: > { %s1720_s17 = sld [smem:[#allocation14_spill]]  ;;  %s1721_s4 = sld [smem:[#allocation23_spill]] }
 0x285   : > { %s564_s24 = sshll.u32 %s1546_s18, 4  ;;  %s551_s1 = scalar_lea.sflag [#allocation5], %s1518_s13  ;;  %s565_s24 = int_to_ptr.vmem [resolvable:$true] %s564_s24 }
 0x286   : > { %s1085_s7 = scalar_lea.vmem %s565_s24, 128  ;;  %p1722_p13 = scmp.ne.s32.totalorder %s1706_s5, 0 }
 0x287   : > { %p1086_p3 = scmp.ne.s32.totalorder %s565_s24, %s1085_s7  ;;  %s1223_s25 = smov [#allocation9]  }
 0x288   : > { %s1089_s11 = sshll.u32 %s1223_s25, 4  ;;  %s1090_s11 = int_to_ptr.vmem [resolvable:$false] %s1089_s11 }
 0x289   : > { %p1087_p9 = pnand %p1086_p3, %p1722_p13  ;;  %s1091_s30 = scalar_lea.vmem %s1090_s11, 256 }
 0x28a   : > { %s718_s12 = sshll.u32 %s1720_s17, 7  ;;  %p1092_p11 = scmp.lt.s32.totalorder %s565_s24, %s1090_s11 }
 0x28b   : > { %s1612_s9 = scalar_lea.hbm %s1721_s4, %s718_s12  ;;  %p1088_p12 = pneg %p1087_p9 }
 0x28c   : > { %p1093_p2 = scmp.lt.s32.totalorder %s1091_s30, %s1085_s7 }
 0x28e   : > { %p1094_p1 = por %p1093_p2, %p1092_p11 }
 0x290   : > { %p1095_p5 = pnand %p1094_p1, %p1088_p12 }
 0x292   : > { %1098 = shalt.err (!%p1095_p5)
}
 0x293   : > { %s1099_s13 = scalar_lea.hbm %s1612_s9, 128  ;;  %s1103_s29 = scalar_lea.hbm %s1721_s4, 256 }
 0x294   : > { %p1100_p7 = scmp.ne.s32.totalorder %s1612_s9, %s1099_s13  ;;  %p1104_p10 = scmp.lt.u32.totalorder %s1612_s9, %s1721_s4 }
 0x295   : > { %p1105_p6 = scmp.lt.u32.totalorder %s1103_s29, %s1099_s13  ;;  %p1107_p3 = scmp.lt.u32.totalorder %s1099_s13, %s1612_s9 }
 0x296   : > { %p1101_p8 = pnand %p1100_p7, %p1722_p13 }
 0x297   : > { %p1106_p0 = por %p1105_p6, %p1104_p10 }
 0x298   : > { %p1102_p4 = pneg %p1101_p8 }
 0x299   : > { %p1108_p9 = por %p1107_p3, %p1106_p0 }
 0x29b   : > { %p1109_p12 = pnand %p1108_p9, %p1102_p4 }
 0x29d   : > { %1112 = shalt.err (!%p1109_p12)
}
 0x29e   : > { %880 = dma.vmem_to_hbm [thread:$0]  (%p1722_p13), %s565_s24, 128, %s1612_s9, %s551_s1  }
 0x29f PF: > { %p897_p11 = scmp.ge.s32.totalorder %s1211_s28, 2  ;;  %s576_s16 = sand.u32 1, %s1183_s21  }
 0x2a0   : > { %p1723_p2 = scmp.ne.s32.totalorder %s1707_s6, 0  ;;  %s577_s27 = scalar_lea.sflag [#allocation5], %s576_s16 }
 0x2a2   : > { %p893_p1 = pnand %p897_p11, %p1723_p2 }
 0x2a4   : > { %1166 = dma.done.wait (!%p893_p1), %s577_s27, 128  }
 0x2a5   : > { %1168 = vsyncadd (!%p893_p1), %s577_s27, 4294967168  ;;  %s24_s28 = sadd.s32 1, %s1211_s28   ;;  %s1724_s8 = sld [smem:[#allocation18_spill]] }
 0x2a6   : > { %p21_p5 = scmp.ge.s32.totalorder %s24_s28, 6   ;;  %s1725_s5 = sld [smem:[#allocation13_spill]] }
 0x2a7   : > { %s1726_s23 = sld [smem:[#allocation19_spill]]  ;;  %s1727_s25 = sld [smem:[#allocation15_spill]] }
 0x2a8   : > { %s1728_s17 = sld [smem:[#allocation16_spill]]  ;;  %s1729_s27 = sld [smem:[#allocation17_spill]] }
 0x2a9   : > { %s1730_s18 = smov %s1175_s19  ;;  %s1731_s19 = smov %s1179_s20 }
 0x2aa   : > { %s1733_s21 = smov %s1187_s22  ;;  %s1735_s24 = smov %s1203_s26 }
 0x2ab   : > { %s1732_s20 = smov %s1724_s8  ;;  %23 = sbr.rel (!%p21_p5) target bundleno = 16 (0x10), region = 120 }
 0x2ac   : > { %s1734_s22 = smov %s1725_s5 }
 0x2ae   : > { %s1736_s26 = smov %s1728_s17 }
 0x2b2   :  { %582 = vsyncpa [#allocation4], 1 }
 0x2b3   :  { %584 = vsyncpa [#allocation4 + $0x1], 1 }
 0x2b4   :  { %585 = vsyncpa [#allocation7], 1 }
 0x2b5   :  { %587 = vsyncpa [#allocation7 + $0x1], 1 }
 0x2b6   :  { %588 = vsyncpa [#allocation5], 1 }
 0x2b7   :  { %590 = vsyncpa [#allocation5 + $0x1], 1 }

</bundles_post_ra>
